<compile_context>
chip_gen: v7x
topology: tpu7x:2x2x1
jax: 0.10.0
libtpu: 0.0.40
codegen_flags: <defaults>
</compile_context>

<pallas_src>
import functools
import math

import jax
import jax.numpy as jnp
from jax.experimental import pallas as pl
from jax.experimental.pallas import tpu as pltpu


def _round_up(x, n):
    return (x + n - 1) // n * n


def _logit_or_inf(p):
    if p <= 0.0:
        return float("-inf")
    if p >= 1.0:
        return float("inf")
    return math.log(p / (1.0 - p))


def _cls_loss_kernel(logits_ref, targets_ref, out_ref, *, m_lo, m_hi, alpha,
                     num_labels, batch_size, batch_tile, binary_targets):
    x = logits_ref[...].astype(jnp.float32)    # (TB, C)
    y = targets_ref[...].astype(jnp.float32)   # (TB, C)

    # In-kernel row masking (no host-side padding). batch_size is static.
    row = pl.program_id(0) * batch_tile + jax.lax.broadcasted_iota(
        jnp.int32, (batch_tile, 1), 0)
    valid = row < batch_size                                   # (TB, 1)
    x = jnp.where(valid, x, 0.0)
    y = jnp.where(valid, y, 0.0)

    # theta in logit space: sign(y_hat-0.5) == sign(x); 0.5+-m thresholds are
    # precomputed logits, so the mask work runs on the VPU in parallel with the
    # EUP stream instead of waiting on sigmoid.
    cond_a = ((x > 0.0) & (y < 0.5)) | ((x < 0.0) & (y > 0.5))
    cond_b = (x > m_lo) & (x < m_hi)
    theta = cond_a | cond_b

    y_hat = jax.nn.sigmoid(x)

    if binary_targets:
        # Hard {0,1} labels: one log per element instead of two.
        is_pos = y > 0.5
        l = jnp.log(jnp.where(is_pos, y_hat, 1.0 - y_hat) + 1e-5)
        term_p = jnp.where(theta & is_pos, l, 0.0)
        term_n = jnp.where(theta & (~is_pos), l, 0.0)
    else:
        # Exact path for soft / fractional targets.
        term_p = jnp.where(theta, y * jnp.log(y_hat + 1e-5), 0.0)
        term_n = jnp.where(theta, (1.0 - y) * jnp.log(1.0 - y_hat + 1e-5), 0.0)

    pos_sum = jnp.sum(y, axis=-1, keepdims=True)               # (TB, 1)
    neg_sum = jnp.float32(num_labels) - pos_sum                # C is static

    # Safe denominators for masked-out rows only (their loss is zeroed below);
    # genuinely degenerate rows keep the reference's divide-by-zero behaviour.
    den_p = jnp.where(valid, pos_sum, 1.0)
    den_n = jnp.where(valid, neg_sum, 1.0)

    loss_row = (-jnp.sum(term_p, axis=-1, keepdims=True) / den_p
                - alpha * jnp.sum(term_n, axis=-1, keepdims=True) / den_n)
    loss_row = jnp.where(valid, loss_row, 0.0)                 # (TB, 1)

    # One scalar per grid step (lane-dense writeback is irrelevant at 1 elem).
    out_ref[...] = jnp.sum(loss_row, axis=0, keepdims=True)[None]   # (1,1,1)


def _auto_tile(B, C, itemsize_sum):
    """Pick a batch tile keeping double-buffered inputs under a safe VMEM budget."""
    budget = 16 * 1024 * 1024          # safe on v7x (64 MiB VMEM, 32 MiB scoped)
    vmem_limit = 32 * 1024 * 1024
    try:
        info = pltpu.get_tpu_info()
        big_vmem = getattr(info, "vmem_capacity_bytes", 0) >= 100 * 1024 * 1024
        # Only spend extra VMEM (v5e/v6e, 128 MiB) when C is so large that the
        # 16 MiB budget would force tiles below ~512 rows.
        if big_vmem and (budget // max(1, 2 * C * itemsize_sum)) < 512:
            budget = 32 * 1024 * 1024
            vmem_limit = 64 * 1024 * 1024
    except Exception:
        pass
    cap_rows = budget // max(1, 2 * C * itemsize_sum)
    tile = min(2048, max(8, (cap_rows // 8) * 8))
    return tile, vmem_limit


def cls_loss(logits, targets, m, alpha, *, batch_tile=None, binary_targets=None):
    """Pallas implementation of clsLoss.forward. Returns a scalar (float32).

    Store logits/targets in bf16 (or int8/bool targets) to halve HBM traffic;
    the kernel upcasts to f32 internally. Set binary_targets=True for hard
    {0,1} labels to enable the single-log fast path (auto for int/bool dtypes).
    """
    B, C = logits.shape
    assert targets.shape == (B, C)

    if binary_targets is None:
        binary_targets = (jnp.issubdtype(targets.dtype, jnp.integer)
                          or jnp.issubdtype(targets.dtype, jnp.bool_))

    itemsize_sum = logits.dtype.itemsize + targets.dtype.itemsize
    auto_tile, vmem_limit = _auto_tile(B, C, itemsize_sum)
    tile = auto_tile if batch_tile is None else batch_tile
    tile = max(8, (tile // 8) * 8)
    tile = min(tile, _round_up(B, 8))
    # Guarantee >=2 grid steps when possible: negligible cost on 1-TC chips
    # (~0.35 us), enables 2-TensorCore sharding on v7x.
    if pl.cdiv(B, tile) < 2 and B > 8:
        tile = max(8, _round_up(pl.cdiv(B, 2), 8))
    num_tiles = pl.cdiv(B, tile)

    m_lo = _logit_or_inf(0.5 - float(m))   # y_hat > 0.5-m  <=>  x > m_lo
    m_hi = _logit_or_inf(0.5 + float(m))   # y_hat < 0.5+m  <=>  x < m_hi

    per_tile = pl.pallas_call(
        functools.partial(
            _cls_loss_kernel, m_lo=m_lo, m_hi=m_hi, alpha=float(alpha),
            num_labels=C, batch_size=B, batch_tile=tile,
            binary_targets=bool(binary_targets)),
        out_shape=jax.ShapeDtypeStruct((num_tiles, 1, 1), jnp.float32),
        grid_spec=pltpu.PrefetchScalarGridSpec(
            num_scalar_prefetch=0,
            grid=(num_tiles,),
            in_specs=[
                pl.BlockSpec((tile, C), lambda i: (i, 0)),
                pl.BlockSpec((tile, C), lambda i: (i, 0)),
            ],
            out_specs=pl.BlockSpec((1, 1, 1), lambda i: (i, 0, 0)),
        ),
        compiler_params=pltpu.CompilerParams(
            dimension_semantics=("parallel",),   # 2-TC sharding on v7x
            vmem_limit_bytes=vmem_limit,
        ),
    )(logits, targets)

    # Tiny glue: sum the per-tile partial sums and divide by the true batch.
    return jnp.sum(per_tile) / B


def cls_loss_ref(logits, targets, m, alpha):
    """Pure-JAX reference mirroring the PyTorch module exactly."""
    y_hat = jax.nn.sigmoid(logits.astype(jnp.float32))
    y = targets.astype(jnp.float32)
    theta = ((y_hat - 0.5) * (y - 0.5) < 0) | ((y_hat > 0.5 - m) & (y_hat < 0.5 + m))
    theta = theta.astype(jnp.float32)
    loss_p = -jnp.sum(theta * y * jnp.log(y_hat + 1e-5), axis=-1) / jnp.sum(y, axis=-1)
    loss_n = -jnp.sum(theta * (1 - y) * jnp.log(1 - y_hat + 1e-5), axis=-1) / jnp.sum(1 - y, axis=-1)
    return jnp.mean(loss_p + alpha * loss_n)


if __name__ == "__main__":
    # clsLoss(m, alpha) hyper-parameters (deterministic, in-script).
    m = 0.2
    alpha = 1.0
    key = jax.random.PRNGKey(0)

    def _mk(k, B, C, dtype=jnp.float32):
        kl, kt = jax.random.split(k)
        logits = jax.random.normal(kl, (B, C), dtype=jnp.float32).astype(dtype)
        targets = jax.random.bernoulli(kt, p=0.5, shape=(B, C)).astype(dtype)
        return logits, targets

    # --- 1. Small primary check: batch=8, num_labels=128 (exact soft path) ---
    key, k = jax.random.split(key)
    lg, tg = _mk(k, 8, 128)
    out = jax.block_until_ready(cls_loss(lg, tg, m, alpha))
    ref = cls_loss_ref(lg, tg, m, alpha)
    assert jnp.allclose(out, ref, rtol=1e-5, atol=1e-5), (out, ref)

    # --- 2. Ragged batch: B not divisible by tile -> in-kernel row masking ---
    key, k = jax.random.split(key)
    lg, tg = _mk(k, 10, 128)
    out = jax.block_until_ready(cls_loss(lg, tg, m, alpha))
    ref = cls_loss_ref(lg, tg, m, alpha)
    assert jnp.allclose(out, ref, rtol=1e-5, atol=1e-5), (out, ref)

    # --- 3. Large multi-tile grid (auto batch_tile) ---------------------------
    key, k = jax.random.split(key)
    lg, tg = _mk(k, 4096, 256)
    out = jax.block_until_ready(cls_loss(lg, tg, m, alpha))
    ref = cls_loss_ref(lg, tg, m, alpha)
    assert jnp.allclose(out, ref, rtol=1e-4, atol=1e-5), (out, ref)

    # --- 4. Binary-labels fast path (single log) ------------------------------
    key, k = jax.random.split(key)
    lg, tg = _mk(k, 64, 128)
    out = jax.block_until_ready(cls_loss(lg, tg, m, alpha, binary_targets=True))
    ref = cls_loss_ref(lg, tg, m, alpha)
    assert jnp.allclose(out, ref, rtol=1e-5, atol=1e-5), (out, ref)

    # --- 5. bf16 storage path (half HBM traffic; kernel upcasts internally) ---
    key, k = jax.random.split(key)
    lg, tg = _mk(k, 512, 128, dtype=jnp.bfloat16)
    out = jax.block_until_ready(cls_loss(lg, tg, m, alpha, binary_targets=True))
    ref = cls_loss_ref(lg, tg, m, alpha)
    assert jnp.allclose(out, ref, rtol=1e-4, atol=1e-4), (out, ref)

    print("KERNEL_OK")
</pallas_src>

<mosaic_0001>
module attributes {stable_mosaic.version = 11 : i64} {
  func.func @_cls_loss_kernel(%arg0: i32, %arg1: memref<8x128xf32, #tpu.memory_space<vmem>>, %arg2: memref<8x128xf32, #tpu.memory_space<vmem>>, %arg3: memref<1x1x1xf32, #tpu.memory_space<vmem>>) attributes {dimension_semantics = [#tpu.dimension_semantics<parallel>], iteration_bounds = array<i64: 1>, scalar_prefetch = 0 : i64, scratch_operands = 0 : i64, tpu.core_type = #tpu.core_type<tc>, window_params = [{transform_indices = @transform_0, window_bounds = array<i64: 8, 128>}, {transform_indices = @transform_1, window_bounds = array<i64: 8, 128>}, {transform_indices = @transform_2, window_bounds = array<i64: 1, 1, 1>}]} {
    %c0 = arith.constant 0 : index
    %c0_0 = arith.constant 0 : index
    %0 = vector.load %arg1[%c0, %c0_0] : memref<8x128xf32, #tpu.memory_space<vmem>>, vector<8x128xf32>
    %c0_1 = arith.constant 0 : index
    %c0_2 = arith.constant 0 : index
    %1 = vector.load %arg2[%c0_1, %c0_2] : memref<8x128xf32, #tpu.memory_space<vmem>>, vector<8x128xf32>
    %c8_i32 = arith.constant 8 : i32
    %2 = arith.muli %arg0, %c8_i32 : i32
    %3 = tpu.iota {dimensions = array<i32: 0>} : vector<8x1xi32>
    %4 = vector.broadcast %2 : i32 to vector<8x1xi32>
    %5 = arith.addi %4, %3 : vector<8x1xi32>
    %c8_i32_3 = arith.constant 8 : i32
    %6 = vector.broadcast %c8_i32_3 : i32 to vector<8x1xi32>
    %7 = arith.cmpi slt, %5, %6 : vector<8x1xi32>
    %cst = arith.constant 0.000000e+00 : f32
    %8 = vector.shape_cast %7 : vector<8x1xi1> to vector<8x1xi1>
    %9 = vector.broadcast %8 : vector<8x1xi1> to vector<8x128xi1>
    %10 = vector.broadcast %cst : f32 to vector<8x128xf32>
    %11 = arith.select %9, %0, %10 : vector<8x128xi1>, vector<8x128xf32>
    %cst_4 = arith.constant 0.000000e+00 : f32
    %12 = vector.shape_cast %7 : vector<8x1xi1> to vector<8x1xi1>
    %13 = vector.broadcast %12 : vector<8x1xi1> to vector<8x128xi1>
    %14 = vector.broadcast %cst_4 : f32 to vector<8x128xf32>
    %15 = arith.select %13, %1, %14 : vector<8x128xi1>, vector<8x128xf32>
    %cst_5 = arith.constant 0.000000e+00 : f32
    %16 = vector.broadcast %cst_5 : f32 to vector<8x128xf32>
    %17 = arith.cmpf ogt, %11, %16 : vector<8x128xf32>
    %cst_6 = arith.constant 5.000000e-01 : f32
    %18 = vector.broadcast %cst_6 : f32 to vector<8x128xf32>
    %19 = arith.cmpf olt, %15, %18 : vector<8x128xf32>
    %20 = arith.andi %17, %19 : vector<8x128xi1>
    %cst_7 = arith.constant 0.000000e+00 : f32
    %21 = vector.broadcast %cst_7 : f32 to vector<8x128xf32>
    %22 = arith.cmpf olt, %11, %21 : vector<8x128xf32>
    %cst_8 = arith.constant 5.000000e-01 : f32
    %23 = vector.broadcast %cst_8 : f32 to vector<8x128xf32>
    %24 = arith.cmpf ogt, %15, %23 : vector<8x128xf32>
    %25 = arith.andi %22, %24 : vector<8x128xi1>
    %26 = arith.ori %20, %25 : vector<8x128xi1>
    %cst_9 = arith.constant -0.847297847 : f32
    %27 = vector.broadcast %cst_9 : f32 to vector<8x128xf32>
    %28 = arith.cmpf ogt, %11, %27 : vector<8x128xf32>
    %cst_10 = arith.constant 0.847297847 : f32
    %29 = vector.broadcast %cst_10 : f32 to vector<8x128xf32>
    %30 = arith.cmpf olt, %11, %29 : vector<8x128xf32>
    %31 = arith.andi %28, %30 : vector<8x128xi1>
    %32 = arith.ori %26, %31 : vector<8x128xi1>
    %33 = arith.negf %11 : vector<8x128xf32>
    %34 = math.exp %33 : vector<8x128xf32>
    %cst_11 = arith.constant 1.000000e+00 : f32
    %35 = vector.broadcast %cst_11 : f32 to vector<8x128xf32>
    %36 = arith.addf %35, %34 : vector<8x128xf32>
    %37 = arith.divf %35, %36 : vector<8x128xf32>
    %cst_12 = arith.constant 9.99999974E-6 : f32
    %38 = vector.broadcast %cst_12 : f32 to vector<8x128xf32>
    %39 = arith.addf %37, %38 : vector<8x128xf32>
    %40 = math.log %39 : vector<8x128xf32>
    %41 = arith.mulf %15, %40 : vector<8x128xf32>
    %cst_13 = arith.constant 0.000000e+00 : f32
    %42 = vector.broadcast %cst_13 : f32 to vector<8x128xf32>
    %43 = arith.select %32, %41, %42 : vector<8x128xi1>, vector<8x128xf32>
    %cst_14 = arith.constant 1.000000e+00 : f32
    %44 = vector.broadcast %cst_14 : f32 to vector<8x128xf32>
    %45 = arith.subf %44, %15 : vector<8x128xf32>
    %cst_15 = arith.constant 1.000000e+00 : f32
    %46 = vector.broadcast %cst_15 : f32 to vector<8x128xf32>
    %47 = arith.subf %46, %37 : vector<8x128xf32>
    %cst_16 = arith.constant 9.99999974E-6 : f32
    %48 = vector.broadcast %cst_16 : f32 to vector<8x128xf32>
    %49 = arith.addf %47, %48 : vector<8x128xf32>
    %50 = math.log %49 : vector<8x128xf32>
    %51 = arith.mulf %45, %50 : vector<8x128xf32>
    %cst_17 = arith.constant 0.000000e+00 : f32
    %52 = vector.broadcast %cst_17 : f32 to vector<8x128xf32>
    %53 = arith.select %32, %51, %52 : vector<8x128xi1>, vector<8x128xf32>
    %cst_18 = arith.constant dense<0.000000e+00> : vector<8xf32>
    %54 = vector.multi_reduction <add>, %15, %cst_18 [1] : vector<8x128xf32> to vector<8xf32>
    %55 = vector.shape_cast %54 : vector<8xf32> to vector<8x1xf32>
    %cst_19 = arith.constant 1.280000e+02 : f32
    %56 = vector.broadcast %cst_19 : f32 to vector<8x1xf32>
    %57 = arith.subf %56, %55 : vector<8x1xf32>
    %cst_20 = arith.constant 1.000000e+00 : f32
    %58 = vector.broadcast %cst_20 : f32 to vector<8x1xf32>
    %59 = arith.select %7, %55, %58 : vector<8x1xi1>, vector<8x1xf32>
    %cst_21 = arith.constant 1.000000e+00 : f32
    %60 = vector.broadcast %cst_21 : f32 to vector<8x1xf32>
    %61 = arith.select %7, %57, %60 : vector<8x1xi1>, vector<8x1xf32>
    %cst_22 = arith.constant dense<0.000000e+00> : vector<8xf32>
    %62 = vector.multi_reduction <add>, %43, %cst_22 [1] : vector<8x128xf32> to vector<8xf32>
    %63 = vector.shape_cast %62 : vector<8xf32> to vector<8x1xf32>
    %cst_23 = arith.constant 0.000000e+00 : f32
    %64 = vector.broadcast %cst_23 : f32 to vector<8x1xf32>
    %65 = arith.subf %64, %63 : vector<8x1xf32>
    %66 = arith.divf %65, %59 : vector<8x1xf32>
    %cst_24 = arith.constant dense<0.000000e+00> : vector<8xf32>
    %67 = vector.multi_reduction <add>, %53, %cst_24 [1] : vector<8x128xf32> to vector<8xf32>
    %68 = vector.shape_cast %67 : vector<8xf32> to vector<8x1xf32>
    %cst_25 = arith.constant 1.000000e+00 : f32
    %69 = vector.broadcast %cst_25 : f32 to vector<8x1xf32>
    %70 = arith.mulf %69, %68 : vector<8x1xf32>
    %71 = arith.divf %70, %61 : vector<8x1xf32>
    %72 = arith.subf %66, %71 : vector<8x1xf32>
    %cst_26 = arith.constant 0.000000e+00 : f32
    %73 = vector.broadcast %cst_26 : f32 to vector<8x1xf32>
    %74 = arith.select %7, %72, %73 : vector<8x1xi1>, vector<8x1xf32>
    %cst_27 = arith.constant dense<0.000000e+00> : vector<1xf32>
    %75 = vector.multi_reduction <add>, %74, %cst_27 [0] : vector<8x1xf32> to vector<1xf32>
    %76 = vector.shape_cast %75 : vector<1xf32> to vector<1x1xf32>
    %77 = vector.shape_cast %76 : vector<1x1xf32> to vector<1x1x1xf32>
    %c0_28 = arith.constant 0 : index
    %c0_29 = arith.constant 0 : index
    %c0_30 = arith.constant 0 : index
    %78 = vector.load %arg3[%c0_28, %c0_29, %c0_30] : memref<1x1x1xf32, #tpu.memory_space<vmem>>, vector<1x1x1xf32>
    tpu.vector_store %arg3[%c0_28, %c0_29, %c0_30], %77 {strides = array<i32>} : memref<1x1x1xf32, #tpu.memory_space<vmem>>, vector<1x1x1xf32>,
    return
  }
  func.func @transform_0(%arg0: i32) -> (i32, i32) {
    %c0_i32 = arith.constant 0 : i32
    %c0_i32_0 = arith.constant 0 : i32
    return %arg0, %c0_i32 : i32, i32
  }
  func.func @transform_1(%arg0: i32) -> (i32, i32) {
    %c0_i32 = arith.constant 0 : i32
    %c0_i32_0 = arith.constant 0 : i32
    return %arg0, %c0_i32 : i32, i32
  }
  func.func @transform_2(%arg0: i32) -> (i32, i32, i32) {
    %c0_i32 = arith.constant 0 : i32
    %c0_i32_0 = arith.constant 0 : i32
    %c0_i32_1 = arith.constant 0 : i32
    return %arg0, %c0_i32, %c0_i32_0 : i32, i32, i32
  }
}

</mosaic_0001>

<bundles_post_ra>
// kernel: tpu_custom_call.1
= control target key start
LH: loop header
LB: loop body
LE: loop exit
PB: predicated region body
PF: predicated region fallthrough
CT: control target
= control target key end

     0   :  { %7 = vsyncpa [#allocation3], 0  ;;  %s259_s0 = inlined_call_operand.hbm [shape: f32[8,128], index: 0, kind: input, shape index: {}]   ;;  %s260_s1 = inlined_call_operand.hbm [shape: f32[8,128], index: 1, kind: input, shape index: {}]   ;;  %s261_s2 = inlined_call_operand.hbm [shape: f32[1,1,1], index: 2, kind: output, shape index: {}]  }
   0x1   :  { %8 = vsyncpa [#allocation6], 0 }
   0x2   :  { %9 = vsyncpa [#allocation4], 0  ;;  %s205_s9 = smov [#allocation2]   ;;  %s206_s11 = smov [#allocation5]  }
   0x3   :  { %s16_s10 = sshll.u32 %s205_s9, 4  ;;  %s26_s12 = sshll.u32 %s206_s11, 4  ;;  %s17_s10 = int_to_ptr.vmem [resolvable:$true] %s16_s10  ;;  %s27_s12 = int_to_ptr.vmem [resolvable:$true] %s26_s12 }
   0x4   :  { %s133_s15 = scalar_lea.hbm %s259_s0, 128 }
   0x5   :  { %p134_p0 = scmp.ne.s32.totalorder %s259_s0, %s133_s15  ;;  %p137_p1 = scmp.lt.u32.totalorder %s133_s15, %s259_s0 }
   0x7   :  { %p139_p2 = pnand %p137_p1, %p134_p0 }
   0x9   :  { %142 = shalt.err (!%p139_p2)
}
   0xa   :  { %s143_s20 = scalar_lea.vmem %s17_s10, 128  ;;  %p148_p4 = scmp.lt.s32.totalorder %s17_s10, %s17_s10 }
   0xb   :  { %p144_p3 = scmp.ne.s32.totalorder %s17_s10, %s143_s20  ;;  %p149_p5 = scmp.lt.s32.totalorder %s143_s20, %s143_s20 }
   0xd   :  { %p150_p6 = por %p149_p5, %p148_p4 }
   0xf   :  { %p151_p7 = pnand %p150_p6, %p144_p3 }
  0x11   :  { %154 = shalt.err (!%p151_p7)
}
  0x12   :  { %19 = dma.hbm_to_vmem [thread:$0]  %s259_s0, 128, %s17_s10, [#allocation3]  }
  0x13   :  { %s155_s25 = scalar_lea.hbm %s260_s1, 128 }
  0x14   :  { %p156_p8 = scmp.ne.s32.totalorder %s260_s1, %s155_s25  ;;  %p159_p9 = scmp.lt.u32.totalorder %s155_s25, %s260_s1 }
  0x16   :  { %p161_p10 = pnand %p159_p9, %p156_p8 }
  0x18   :  { %164 = shalt.err (!%p161_p10)
}
  0x19   :  { %s165_s30 = scalar_lea.vmem %s27_s12, 128  ;;  %p170_p12 = scmp.lt.s32.totalorder %s27_s12, %s27_s12 }
  0x1a   :  { %p166_p11 = scmp.ne.s32.totalorder %s27_s12, %s165_s30  ;;  %p171_p13 = scmp.lt.s32.totalorder %s165_s30, %s165_s30 }
  0x1c   :  { %p172_p0 = por %p171_p13, %p170_p12 }
  0x1e   :  { %p173_p1 = pnand %p172_p0, %p166_p11 }
  0x20   :  { %176 = shalt.err (!%p173_p1)
}
  0x21   :  { %29 = dma.hbm_to_vmem [thread:$0]  %s260_s1, 128, %s27_s12, [#allocation6]  }
  0x22   :  { %199 = dma.done.wait [#allocation3], 128  }
  0x23   :  { %200 = vsyncadd [#allocation3], 4294967168 }
  0x24   :  { %201 = dma.done.wait [#allocation6], 128  }
  0x25   :  { %202 = vsyncadd [#allocation6], 4294967168  ;;  %v37_v0 = vld [vmem:[#allocation5] sm:$0xff]  ;;  %v36_v1 = vld [vmem:[#allocation2] sm:$0xff]  ;;  %s207_s1 = smov [#allocation7]   ;;  %vm99_vm11 = vcmask 0  }
  0x26   :  { %77 = vadd.xlane.f32.xlu0 %v37_v0  ;;  %v117_v2 = vmul.f32 -1.442695, %v36_v1  ;;  %vm48_vm0 = vcmp.gt.f32.partialorder %v36_v1, 0.0  ;;  %vm49_vm1 = vcmp.lt.f32.partialorder %v37_v0, 0.5  ;;  %vm51_vm2 = vcmp.lt.f32.partialorder %v36_v1, 0.0  ;;  %s107_s4 = sshll.u32 %s207_s1, 4  ;;  %s108_s4 = int_to_ptr.vmem [resolvable:$true] %s107_s4 }
  0x27   :  { %vm52_vm3 = vcmp.gt.f32.partialorder %v37_v0, 0.5  ;;  %vm50_vm4 = vmand %vm48_vm0, %vm49_vm1  ;;  %vm55_vm6 = vcmp.gt.f32.partialorder %v36_v1, -0.84729785  ;;  %vm56_vm7 = vcmp.lt.f32.partialorder %v36_v1, 0.84729785  ;;  %v70_v11 = vsub.f32 1.0, %v37_v0  ;;  %p182_p3 = scmp.lt.s32.totalorder %s108_s4, %s108_s4 }
  0x28   :  { %121 = vpow2.f32 %v117_v2  ;;  %vm53_vm5 = vmand %vm51_vm2, %vm52_vm3  ;;  %s177_s5 = scalar_lea.vmem %s108_s4, 16  ;;  %s181_s6 = scalar_lea.vmem %s108_s4, 32 }
  0x29   :  { %vm54_vm8 = vmor %vm50_vm4, %vm53_vm5  ;;  %p178_p2 = scmp.ne.s32.totalorder %s108_s4, %s177_s5  ;;  %p183_p4 = scmp.lt.s32.totalorder %s181_s6, %s177_s5 }
  0x2a   :  { %vm57_vm9 = vmand %vm55_vm6, %vm56_vm7 }
  0x2b   :  { %vm58_vm10 = vmor %vm54_vm8, %vm57_vm9  ;;  %p184_p5 = por %p183_p4, %p182_p3 }
  0x2d   :  { %p185_p6 = pnand %p184_p5, %p178_p2 }
  0x32   :  { %v122_v3 = vpop.eup %121 }
  0x33   :  { %v62_v4 = vadd.f32 1.0, %v122_v3 }
  0x35   :  { %123 = vrcp.f32 %v62_v4 }
  0x3f   :  { %v124_v5 = vpop.eup %123 }
  0x40   :  { %v65_v6 = vadd.f32 1e-05, %v124_v5  ;;  %v71_v7 = vsub.f32 1.0, %v124_v5 }
  0x42   :  { %125 = vlog2.f32 %v65_v6  ;;  %v72_v8 = vadd.f32 1e-05, %v71_v7 }
  0x44   :  { %127 = vlog2.f32 %v72_v8 }
  0x4c   :  { %v126_v9 = vpop.eup %125 }
  0x4d   :  { %v67_v10 = vmul.f32 0.6931472, %v126_v9 }
  0x4e   :  { %v128_v12 = vpop.eup %127 }
  0x4f   :  { %v68_v13 = vmul.f32 %v67_v10, %v37_v0  ;;  %v74_v14 = vmul.f32 0.6931472, %v128_v12 }
  0x51   :  { %v69_v15 = vsel %vm58_vm10, %v68_v13, 0.0  ;;  %v75_v16 = vmul.f32 %v74_v14, %v70_v11 }
  0x52   :  { %82 = vadd.xlane.f32.xlu0 %v69_v15 }
  0x53   :  { %v76_v17 = vsel %vm58_vm10, %v75_v16, 0.0 }
  0x54   :  { %87 = vadd.xlane.f32.xlu1 %v76_v17 }
  0xb3   :  { %v78_v18 = vpop.xlane.xlu0 %77 }
  0xb4   :  { %v79_v19 = vsub.f32 128.0, %v78_v18 }
  0xb6   :  { %129 = vrcp.f32 %v79_v19 }
  0xb7   :  { %131 = vrcp.f32 %v78_v18 }
  0xc0   :  { %v130_v20 = vpop.eup %129 }
  0xc1   :  { %v132_v23 = vpop.eup %131 }
  0xdf   :  { %v83_v21 = vpop.xlane.xlu0 %82 }
  0xe0   :  { %v84_v22 = vsub.f32 0.0, %v83_v21 }
  0xe1   :  { %v88_v24 = vpop.xlane.xlu1 %87 }
  0xe2   :  { %v86_v25 = vmul.f32 %v132_v23, %v84_v22  ;;  %v90_v26 = vmul.f32 %v130_v20, %v88_v24 }
  0xe4   :  { %v91_v27 = vsub.f32 %v86_v25, %v90_v26 }
  0xe6   :  { %v93_v28 = vrot.slane %v91_v27, 4 }
  0xe8   :  { %v94_v29 = vadd.f32 %v93_v28, %v91_v27 }
  0xea   :  { %v95_v30 = vrot.slane %v94_v29, 2 }
  0xec   :  { %v96_v31 = vadd.f32 %v95_v30, %v94_v29 }
  0xee   :  { %v97_v32 = vrot.slane %v96_v31, 1 }
  0xf0   :  { %v98_v33 = vadd.f32 %v97_v32, %v96_v31 }
  0xf2   :  { %100 = vst.msk [vmem:[#allocation7] sm:$0x1] %vm99_vm11, %v98_v33 }
  0xf3   :  { %188 = shalt.err (!%p185_p6)
}
  0xf4   :  { %s189_s9 = scalar_lea.hbm %s261_s2, 16 }
  0xf5   :  { %p190_p7 = scmp.ne.s32.totalorder %s261_s2, %s189_s9  ;;  %p193_p8 = scmp.lt.u32.totalorder %s189_s9, %s261_s2 }
  0xf7   :  { %p195_p9 = pnand %p193_p8, %p190_p7 }
  0xf9   :  { %198 = shalt.err (!%p195_p9)
}
  0xfa   :  { %110 = dma.vmem_to_hbm [thread:$0]  %s108_s4, 16, %s261_s2, [#allocation4]  }
  0xfb   :  { %203 = dma.done.wait [#allocation4], 16  }
  0xfc   :  { %204 = vsyncadd [#allocation4], 4294967280 }
  0xfd   :  { %114 = vsyncpa [#allocation3], 1 }
  0xfe   :  { %115 = vsyncpa [#allocation6], 1 }
  0xff   :  { %116 = vsyncpa [#allocation4], 1 }

</bundles_post_ra>
